<compile_context>
chip_gen: v7x
topology: tpu7x:2x2x1
jax: 0.10.0
libtpu: 0.0.40
codegen_flags: <defaults>
</compile_context>

<pallas_src>
import functools

import jax
import jax.numpy as jnp
from jax.experimental import pallas as pl
from jax.experimental.pallas import tpu as pltpu

K, STRIDE, PAD = 3, 1, 1          # module defaults; kernels assume k=3, stride=1, pad=1
_INV_K2 = 1.0 / float(K * K)


def _round_up(x, m):
    return (x + m - 1) // m * m


def _pick_channel_block(c, l, budget_bytes=4 << 20):
    """Whole-C block if its f32 working set fits the budget, else the largest
    multiple-of-8 divisor that fits (blocked dims must be %8 unless they span
    the full array)."""
    per_ch = 4 * (3 * l + 2 * 128)            # scratch row + in/out rows, f32, rough
    if c % 8 or c * per_ch <= budget_bytes:
        # TODO(synk): very large C that is not a multiple of 8 would want an
        # uneven last block; not needed for searchspace channel counts.
        return c
    blk = min(c, max(8, (budget_bytes // per_ch) // 8 * 8))
    while c % blk:
        blk -= 8
    return max(blk, 8)


def _zero_margins(xp_ref, l, margin):
    """Zero only the halo lanes of the scratch (payload region is overwritten)."""
    cb, lp = xp_ref.shape
    xp_ref[:, 0:margin] = jnp.zeros((cb, margin), jnp.float32)
    xp_ref[:, margin + l:lp] = jnp.zeros((cb, lp - margin - l), jnp.float32)


def _pool3x3_from_scratch(xp_ref, l, width, margin):
    """Separable 3x3 window sum on a flat (cb, LP) f32 scratch.

    The payload (one flattened H*W plane per channel) sits at lanes
    [margin, margin+l); lanes outside are zero, so out-of-image neighbours
    read zeros (the pool's zero padding).  Returns (cb, l) f32 window sums.
    """
    center = xp_ref[:, margin:margin + l]
    left = xp_ref[:, margin - 1:margin - 1 + l]      # value at col-1 (junk at col 0)
    right = xp_ref[:, margin + 1:margin + 1 + l]     # value at col+1 (junk at col W-1)
    col = jax.lax.broadcasted_iota(jnp.int32, (center.shape[0], l), 1) % width
    cs = (center
          + jnp.where(col > 0, left, 0.0)
          + jnp.where(col < width - 1, right, 0.0))
    xp_ref[:, margin:margin + l] = cs                # row pass re-reads shifted by +-W
    up = xp_ref[:, margin - width:margin - width + l]    # row-1 (left margin -> 0 for row 0)
    down = xp_ref[:, margin + width:margin + width + l]  # row+1 (right margin -> 0 for last row)
    return cs + up + down


def _pool_kernel(x_ref, o_ref, xp_ref, *, width, margin):
    """Identity projection.  x/o: (1, cb, L); xp: (cb, LP) f32 scratch."""
    l = x_ref.shape[2]
    _zero_margins(xp_ref, l, margin)
    xp_ref[:, margin:margin + l] = x_ref[0].astype(jnp.float32)   # 128-aligned store
    o_ref[0] = (_pool3x3_from_scratch(xp_ref, l, width, margin)
                * _INV_K2).astype(o_ref.dtype)


def _proj_pool_kernel_vpu(w_ref, b_ref, x_ref, o_ref, xp_ref, *, width, margin):
    """Conv1x1 (+bias) on the VPU, fused with the pool (tiny cin*cout).

    w_ref: SMEM (Cout, Cin) f32, b_ref: SMEM (1, Cout) f32,
    x_ref: VMEM (1, Cin, L), o_ref: VMEM (1, cb, L), xp_ref: (cb, LP) f32.
    """
    cin = x_ref.shape[1]
    cb = o_ref.shape[1]
    l = x_ref.shape[2]
    co0 = pl.program_id(1) * cb
    _zero_margins(xp_ref, l, margin)
    xf = x_ref[0].astype(jnp.float32)                 # (Cin, L), lane-dense
    for co in range(cb):                              # unrolled: cb*cin <= 64 MACs
        acc = jnp.full((1, l), b_ref[0, co0 + co], jnp.float32)
        for ci in range(cin):
            acc = acc + w_ref[co0 + co, ci] * xf[ci:ci + 1, :]
        xp_ref[co:co + 1, margin:margin + l] = acc    # straight into the scratch
    o_ref[0] = (_pool3x3_from_scratch(xp_ref, l, width, margin)
                * _INV_K2).astype(o_ref.dtype)


def _proj_pool_kernel_mxu(w_ref, b_ref, x_ref, o_ref, xp_ref, *, width, margin):
    """Conv1x1 (+bias) on the MXU, fused with the pool (larger cin*cout).

    w_ref: VMEM (cb, Cin) in x.dtype, b_ref: VMEM (cb, 1) f32,
    x_ref: VMEM (1, Cin, L), o_ref: VMEM (1, cb, L), xp_ref: (cb, LP) f32.
    """
    l = x_ref.shape[2]
    _zero_margins(xp_ref, l, margin)
    z = jnp.dot(w_ref[...], x_ref[0], preferred_element_type=jnp.float32)
    xp_ref[:, margin:margin + l] = z + b_ref[...]     # (cb, 1) bias broadcast over L
    o_ref[0] = (_pool3x3_from_scratch(xp_ref, l, width, margin)
                * _INV_K2).astype(o_ref.dtype)


def avgpool2d_module(x_nchw, proj_w=None, proj_b=None):
    """Forward pass of the AvgPool2d module.  x_nchw: (N, C, H, W).

    proj_w: (Cout, Cin), proj_b: (Cout,) implement the Conv1x1 projection used
    when in_channels != out_channels; pass None for the Identity case.
    """
    n, c, h, w = x_nchw.shape
    l = h * w
    margin = _round_up(w, 128)                 # left zero halo; keeps payload store aligned
    lp = _round_up(margin + l + w, 128)        # scratch lane extent (>= W right halo)
    x_flat = x_nchw.reshape(n, c, l)           # lane-dense layout; free for contiguous NCHW

    compiler_params = pltpu.CompilerParams(
        dimension_semantics=("parallel", "parallel"),   # feeds both v7x TensorCores
        vmem_limit_bytes=32 * 1024 * 1024,              # safe on v5e/v6e/v7x scoped VMEM
    )
    # TODO(synk): for very large H*W (block exceeding the VMEM budget), add an
    # H-tile grid axis with a 1-row halo instead of flattening the whole plane.

    if proj_w is None:
        cb = _pick_channel_block(c, l)
        out_flat = pl.pallas_call(
            functools.partial(_pool_kernel, width=w, margin=margin),
            out_shape=jax.ShapeDtypeStruct((n, c, l), x_nchw.dtype),
            grid=(n, c // cb),
            in_specs=[pl.BlockSpec((1, cb, l), lambda i, j: (i, j, 0))],
            out_specs=pl.BlockSpec((1, cb, l), lambda i, j: (i, j, 0)),
            scratch_shapes=[pltpu.VMEM((cb, lp), jnp.float32)],
            compiler_params=compiler_params,
        )(x_flat)
        return out_flat.reshape(n, c, h, w)

    # Projection path.
    # TODO(synk): Conv1x1 is not defined in the module snippet; assumed to be
    # nn.Conv2d(in_channels, out_channels, kernel_size=1) with bias.
    cout, cin = proj_w.shape
    if proj_b is None:
        proj_b = jnp.zeros((cout,), jnp.float32)
    cb = _pick_channel_block(cout, l)

    if cin * cout <= 64:
        # Tiny projection (demo case): exact-f32 VPU MAC, SMEM scalar weights.
        w_arg = proj_w.astype(jnp.float32)                   # (Cout, Cin)
        b_arg = proj_b.reshape(1, cout).astype(jnp.float32)  # (1, Cout)
        kernel = functools.partial(_proj_pool_kernel_vpu, width=w, margin=margin)
        w_spec = pl.BlockSpec(memory_space=pltpu.MemorySpace.SMEM)
        b_spec = pl.BlockSpec(memory_space=pltpu.MemorySpace.SMEM)
    else:
        # Larger projection: MXU matmul, (cb, Cin) weight block resident in
        # VMEM, activations fed in their native dtype with f32 accumulation.
        w_arg = proj_w.astype(x_nchw.dtype)                  # (Cout, Cin)
        b_arg = proj_b.reshape(cout, 1).astype(jnp.float32)  # (Cout, 1)
        kernel = functools.partial(_proj_pool_kernel_mxu, width=w, margin=margin)
        w_spec = pl.BlockSpec((cb, cin), lambda i, j: (j, 0))
        b_spec = pl.BlockSpec((cb, 1), lambda i, j: (j, 0))

    out_flat = pl.pallas_call(
        kernel,
        out_shape=jax.ShapeDtypeStruct((n, cout, l), x_nchw.dtype),
        grid=(n, cout // cb),
        in_specs=[w_spec, b_spec,
                  pl.BlockSpec((1, cin, l), lambda i, j: (i, 0, 0))],
        out_specs=pl.BlockSpec((1, cb, l), lambda i, j: (i, j, 0)),
        scratch_shapes=[pltpu.VMEM((cb, lp), jnp.float32)],
        compiler_params=compiler_params,
    )(w_arg, b_arg, x_flat)
    return out_flat.reshape(n, cout, h, w)


def _reference(x, w=None, b=None):
    """Pure-JAX reference: optional 1x1 conv, then AvgPool2d(3,1,1)."""
    if w is not None:
        x = jnp.einsum("oc,nchw->nohw", w.astype(jnp.float32),
                       x.astype(jnp.float32))
        if b is not None:
            x = x + b.astype(jnp.float32)[None, :, None, None]
    s = jax.lax.reduce_window(
        x, 0.0, jax.lax.add,
        window_dimensions=(1, 1, K, K),
        window_strides=(1, 1, STRIDE, STRIDE),
        padding=[(0, 0), (0, 0), (PAD, PAD), (PAD, PAD)],
    )
    return s / float(K * K)


if __name__ == "__main__":
    key = jax.random.PRNGKey(0)
    k1, k2, k3 = jax.random.split(key, 3)

    n, c, h, w = 2, 4, 16, 16
    x = jax.random.normal(k1, (n, c, h, w), dtype=jnp.float32)

    # Identity path (in_channels == out_channels).
    out_id = jax.block_until_ready(avgpool2d_module(x))
    ref_id = _reference(x)
    assert out_id.shape == (n, c, h, w), out_id.shape
    assert jnp.allclose(out_id, ref_id, atol=1e-5, rtol=1e-5), "identity path mismatch"

    # Projection path (in_channels != out_channels -> Conv1x1 then pool).
    cout = 8
    pw = 0.1 * jax.random.normal(k2, (cout, c), dtype=jnp.float32)
    pb = 0.1 * jax.random.normal(k3, (cout,), dtype=jnp.float32)
    out_pr = jax.block_until_ready(avgpool2d_module(x, pw, pb))
    ref_pr = _reference(x, pw, pb)
    assert out_pr.shape == (n, cout, h, w), out_pr.shape
    assert jnp.allclose(out_pr, ref_pr, atol=1e-4, rtol=1e-4), "projection path mismatch"

    print("KERNEL_OK")
</pallas_src>

<mosaic_0001>
module attributes {stable_mosaic.version = 11 : i64} {
  func.func @_pool_kernel(%arg0: i32, %arg1: i32, %arg2: memref<1x4x256xf32, #tpu.memory_space<vmem>>, %arg3: memref<1x4x256xf32, #tpu.memory_space<vmem>>, %arg4: memref<4x512xf32, #tpu.memory_space<vmem>>) attributes {dimension_semantics = [#tpu.dimension_semantics<parallel>, #tpu.dimension_semantics<parallel>], iteration_bounds = array<i64: 2, 1>, scalar_prefetch = 0 : i64, scratch_operands = 1 : i64, tpu.core_type = #tpu.core_type<tc>, window_params = [{transform_indices = @transform_0, window_bounds = array<i64: 1, 4, 256>}, {transform_indices = @transform_1, window_bounds = array<i64: 1, 4, 256>}]} {
    %cst = arith.constant 0.000000e+00 : f32
    %0 = vector.broadcast %cst : f32 to vector<4x128xf32>
    %c0 = arith.constant 0 : index
    %c0_0 = arith.constant 0 : index
    %1 = vector.load %arg4[%c0, %c0_0] : memref<4x512xf32, #tpu.memory_space<vmem>>, vector<4x128xf32>
    tpu.vector_store %arg4[%c0, %c0_0], %0 {strides = array<i32>} : memref<4x512xf32, #tpu.memory_space<vmem>>, vector<4x128xf32>,
    %cst_1 = arith.constant 0.000000e+00 : f32
    %2 = vector.broadcast %cst_1 : f32 to vector<4x128xf32>
    %c0_2 = arith.constant 0 : index
    %c384 = arith.constant 384 : index
    %3 = vector.load %arg4[%c0_2, %c384] : memref<4x512xf32, #tpu.memory_space<vmem>>, vector<4x128xf32>
    tpu.vector_store %arg4[%c0_2, %c384], %2 {strides = array<i32>} : memref<4x512xf32, #tpu.memory_space<vmem>>, vector<4x128xf32>,
    %c0_3 = arith.constant 0 : index
    %c0_4 = arith.constant 0 : index
    %c0_5 = arith.constant 0 : index
    %4 = vector.load %arg2[%c0_3, %c0_4, %c0_5] : memref<1x4x256xf32, #tpu.memory_space<vmem>>, vector<1x4x256xf32>
    %5 = vector.shape_cast %4 : vector<1x4x256xf32> to vector<4x256xf32>
    %c0_6 = arith.constant 0 : index
    %c128 = arith.constant 128 : index
    %6 = vector.load %arg4[%c0_6, %c128] : memref<4x512xf32, #tpu.memory_space<vmem>>, vector<4x256xf32>
    tpu.vector_store %arg4[%c0_6, %c128], %5 {strides = array<i32>} : memref<4x512xf32, #tpu.memory_space<vmem>>, vector<4x256xf32>,
    %c0_7 = arith.constant 0 : index
    %c128_8 = arith.constant 128 : index
    %7 = vector.load %arg4[%c0_7, %c128_8] : memref<4x512xf32, #tpu.memory_space<vmem>>, vector<4x256xf32>
    %c0_9 = arith.constant 0 : index
    %c127 = arith.constant 127 : index
    %8 = vector.load %arg4[%c0_9, %c127] : memref<4x512xf32, #tpu.memory_space<vmem>>, vector<4x256xf32>
    %c0_10 = arith.constant 0 : index
    %c129 = arith.constant 129 : index
    %9 = vector.load %arg4[%c0_10, %c129] : memref<4x512xf32, #tpu.memory_space<vmem>>, vector<4x256xf32>
    %10 = tpu.iota {dimensions = array<i32: 1>} : vector<4x256xi32>
    %c16_i32 = arith.constant 16 : i32
    %c0_i32 = arith.constant 0 : i32
    %11 = arith.cmpi eq, %c16_i32, %c0_i32 : i32
    %c1_i32 = arith.constant 1 : i32
    %12 = arith.select %11, %c1_i32, %c16_i32 : i32
    %13 = vector.broadcast %12 : i32 to vector<4x256xi32>
    %14 = arith.remsi %10, %13 : vector<4x256xi32>
    %c0_i32_11 = arith.constant 0 : i32
    %15 = vector.broadcast %c0_i32_11 : i32 to vector<4x256xi32>
    %16 = arith.cmpi ne, %14, %15 : vector<4x256xi32>
    %c0_i32_12 = arith.constant 0 : i32
    %17 = vector.broadcast %c0_i32_12 : i32 to vector<4x256xi32>
    %18 = arith.cmpi slt, %14, %17 : vector<4x256xi32>
    %c0_i32_13 = arith.constant 0 : i32
    %19 = arith.cmpi slt, %12, %c0_i32_13 : i32
    %20 = vector.broadcast %19 : i1 to vector<4x256xi1>
    %21 = vector.broadcast %20 : vector<4x256xi1> to vector<4x256xi1>
    %22 = arith.xori %18, %21 : vector<4x256xi1>
    %23 = arith.andi %22, %16 : vector<4x256xi1>
    %24 = vector.broadcast %12 : i32 to vector<4x256xi32>
    %25 = arith.addi %14, %24 : vector<4x256xi32>
    %26 = arith.select %23, %25, %14 : vector<4x256xi1>, vector<4x256xi32>
    %c0_i32_14 = arith.constant 0 : i32
    %27 = vector.broadcast %c0_i32_14 : i32 to vector<4x256xi32>
    %28 = arith.cmpi sgt, %26, %27 : vector<4x256xi32>
    %cst_15 = arith.constant 0.000000e+00 : f32
    %29 = vector.broadcast %cst_15 : f32 to vector<4x256xf32>
    %30 = arith.select %28, %8, %29 : vector<4x256xi1>, vector<4x256xf32>
    %31 = arith.addf %7, %30 : vector<4x256xf32>
    %c15_i32 = arith.constant 15 : i32
    %32 = vector.broadcast %c15_i32 : i32 to vector<4x256xi32>
    %33 = arith.cmpi slt, %26, %32 : vector<4x256xi32>
    %cst_16 = arith.constant 0.000000e+00 : f32
    %34 = vector.broadcast %cst_16 : f32 to vector<4x256xf32>
    %35 = arith.select %33, %9, %34 : vector<4x256xi1>, vector<4x256xf32>
    %36 = arith.addf %31, %35 : vector<4x256xf32>
    %c0_17 = arith.constant 0 : index
    %c128_18 = arith.constant 128 : index
    %37 = vector.load %arg4[%c0_17, %c128_18] : memref<4x512xf32, #tpu.memory_space<vmem>>, vector<4x256xf32>
    tpu.vector_store %arg4[%c0_17, %c128_18], %36 {strides = array<i32>} : memref<4x512xf32, #tpu.memory_space<vmem>>, vector<4x256xf32>,
    %c0_19 = arith.constant 0 : index
    %c112 = arith.constant 112 : index
    %38 = vector.load %arg4[%c0_19, %c112] : memref<4x512xf32, #tpu.memory_space<vmem>>, vector<4x256xf32>
    %c0_20 = arith.constant 0 : index
    %c144 = arith.constant 144 : index
    %39 = vector.load %arg4[%c0_20, %c144] : memref<4x512xf32, #tpu.memory_space<vmem>>, vector<4x256xf32>
    %40 = arith.addf %36, %38 : vector<4x256xf32>
    %41 = arith.addf %40, %39 : vector<4x256xf32>
    %cst_21 = arith.constant 0.111111112 : f32
    %42 = vector.broadcast %cst_21 : f32 to vector<4x256xf32>
    %43 = arith.mulf %41, %42 : vector<4x256xf32>
    %c0_22 = arith.constant 0 : index
    %c0_23 = arith.constant 0 : index
    %c0_24 = arith.constant 0 : index
    %44 = vector.load %arg3[%c0_22, %c0_23, %c0_24] : memref<1x4x256xf32, #tpu.memory_space<vmem>>, vector<1x4x256xf32>
    %45 = vector.shape_cast %44 : vector<1x4x256xf32> to vector<4x256xf32>
    %46 = vector.shape_cast %43 : vector<4x256xf32> to vector<1x4x256xf32>
    tpu.vector_store %arg3[%c0_22, %c0_23, %c0_24], %46 {strides = array<i32>} : memref<1x4x256xf32, #tpu.memory_space<vmem>>, vector<1x4x256xf32>,
    return
  }
  func.func @transform_0(%arg0: i32, %arg1: i32) -> (i32, i32, i32) {
    %c0_i32 = arith.constant 0 : i32
    %c0_i32_0 = arith.constant 0 : i32
    return %arg0, %arg1, %c0_i32 : i32, i32, i32
  }
  func.func @transform_1(%arg0: i32, %arg1: i32) -> (i32, i32, i32) {
    %c0_i32 = arith.constant 0 : i32
    %c0_i32_0 = arith.constant 0 : i32
    return %arg0, %arg1, %c0_i32 : i32, i32, i32
  }
}

</mosaic_0001>

<bundles_post_ra>
// kernel: tpu_custom_call.1
= control target key start
LH: loop header
LB: loop body
LE: loop exit
PB: predicated region body
PF: predicated region fallthrough
CT: control target
= control target key end

     0   :  { %6 = vsyncpa [#allocation4], 0  ;;  %s761_s0 = inlined_call_operand.hbm [shape: f32[2,4,256], index: 0, kind: input, shape index: {}]   ;;  %s762_s1 = inlined_call_operand.hbm [shape: f32[2,4,256], index: 1, kind: output, shape index: {}]  }
   0x1   :  { %8 = vsyncpa [#allocation4 + $0x1], 0 }
   0x2   :  { %9 = vsyncpa [#allocation5], 0 }
   0x3   :  { %11 = vsyncpa [#allocation5 + $0x1], 0  ;;  %s585_s6 = smov 0   ;;  %s587_s7 = smov 0  }
   0x4   :  { %s589_s8 = smov 0   ;;  %s591_s9 = smov 0  }
   0x5   :  { %s593_s10 = smov 0   ;;  %s595_s11 = smov 0  }
   0x6 LB: > { %s368_s12 = sadd.s32 4294967295, %s566_s11   ;;  %s369_s13 = sadd.s32 4294967294, %s566_s11   ;;  %s566_s11 = sphi %s595_s11, %s17_s11   ;;  %s562_s10 = sphi %s593_s10, %s778_s10   ;;  %s558_s9 = sphi %s591_s9, %s777_s9   ;;  %s554_s8 = sphi %s589_s8, %s776_s8   ;;  %s550_s7 = sphi %s587_s7, %s775_s7   ;;  %s546_s6 = sphi %s585_s6, %s774_s6  }
   0x7   : > { %s29_s14 = sadd.s32 1, %s562_s10  ;;  %s38_s15 = sadd.s32 1, %s554_s8 }
   0x8   : > { %p31_p0 = scmp.ge.s32.totalorder %s29_s14, 2  ;;  %p45_p1 = scmp.ne.s32.totalorder %s554_s8, %s550_s7 }
   0x9   : > { %p46_p2 = scmp.eq.s32.totalorder %s566_s11, 0  ;;  %p51_p3 = scmp.ne.s32.totalorder %s550_s7, %s546_s6 }
   0xa   : > { %s780_s14 = smov (%p31_p0, %s29_s14), 0  ;;  %p52_p5 = scmp.eq.s32.totalorder %s368_s12, 0 }
   0xb   : > { %p626_p4 = por %p46_p2, %p45_p1  ;;  %s33_s17 = ssub.s32 %s562_s10, %s780_s14 }
   0xc   : > { %p77_p6 = scmp.eq.s32.totalorder %s368_s12, 1  ;;  %p36_p7 = scmp.eq.s32.totalorder %s33_s17, 0 }
   0xd   : > { %p632_p8 = por %p52_p5, %p51_p3  ;;  %p83_p10 = scmp.eq.s32.totalorder %s369_s13, 1 }
   0xe   : > { %p636_p9 = por %p77_p6, %p45_p1  ;;  %p397_p13 = scmp.lt.s32.totalorder %s566_s11, 2 }
   0xf   : > { %s641_s20 = scalar_select %p36_p7, %s554_s8, %s38_s15  }
  0x10   : > { %s766_s19 = scalar_select %p636_p9, 1, 0 }
  0x11   : > { %p643_p11 = por %p83_p10, %p51_p3  ;;  %s103_s22 = sand.u32 1, %s554_s8  }
  0x12   : > { %s372_s23 = sshll.u32 %s103_s22, 3  ;;  %s383_s24 = sshll.u32 %s562_s10, 7 }
  0x13   : > { %s767_s21 = scalar_select %p643_p11, 1, 0 }
  0x14   : > { %s654_s27 = scalar_lea.hbm %s761_s0, %s383_s24  ;;  %s107_s28 = scalar_lea.vmem [#allocation3], %s372_s23 }
  0x15   : > { %s117_s29 = sshll.u32 %s107_s28, 4  ;;  %p660_p0 = pnand %p397_p13, %p626_p4  ;;  %s656_s29 = int_to_ptr.vmem [resolvable:$true] %s117_s29 }
  0x16   : > { %s104_s2 = scalar_lea.sflag [#allocation4], %s103_s22  ;;  %s454_s3 = scalar_lea.hbm %s654_s27, 128 }
  0x17   : > { %p455_p3 = scmp.ne.s32.totalorder %s654_s27, %s454_s3  ;;  %p456_p5 = pneg %p660_p0 }
  0x18   : > { %s459_s12 = scalar_lea.hbm %s761_s0, 256  ;;  %p460_p4 = scmp.lt.u32.totalorder %s654_s27, %s761_s0 }
  0x19   : > { %p457_p6 = pnand %p456_p5, %p455_p3  ;;  %p461_p10 = scmp.lt.u32.totalorder %s459_s12, %s454_s3 }
  0x1a   : > { %p463_p12 = scmp.lt.u32.totalorder %s454_s3, %s654_s27 }
  0x1b   : > { %p458_p7 = pneg %p457_p6  ;;  %p462_p13 = por %p461_p10, %p460_p4 }
  0x1d   : > { %p464_p1 = por %p463_p12, %p462_p13 }
  0x1f   : > { %p465_p2 = pnand %p464_p1, %p458_p7 }
  0x21   : > { %468 = shalt.err (!%p465_p2)
}
  0x22   : > { %s469_s16 = scalar_lea.vmem %s656_s29, 128  ;;  %s568_s17 = smov [#allocation3]  }
  0x23   : > { %p470_p3 = scmp.ne.s32.totalorder %s656_s29, %s469_s16  ;;  %s474_s22 = sshll.u32 %s568_s17, 4  ;;  %s475_s22 = int_to_ptr.vmem [resolvable:$false] %s474_s22 }
  0x24   : > { %s476_s23 = scalar_lea.vmem %s475_s22, 256  ;;  %p477_p9 = scmp.lt.s32.totalorder %s656_s29, %s475_s22 }
  0x25   : > { %p472_p6 = pnand %p470_p3, %p456_p5  ;;  %p478_p4 = scmp.lt.s32.totalorder %s476_s23, %s469_s16 }
  0x27   : > { %p473_p11 = pneg %p472_p6  ;;  %p479_p10 = por %p478_p4, %p477_p9 }
  0x29   : > { %p480_p12 = pnand %p479_p10, %p473_p11 }
  0x2b   : > { %483 = shalt.err (!%p480_p12)
}
  0x2c   : > { %392 = dma.hbm_to_vmem [thread:$0]  (!%p660_p0), %s654_s27, 128, %s656_s29, %s104_s2  }
  0x2d   : > { %p769_p1 = scmp.lt.s32.totalorder %s566_s11, 3  ;;  %p770_p2 = scmp.ge.s32.totalorder %s566_s11, 1 }
  0x2f   : > { %p123_p5 = pnand %p770_p2, %p769_p1 }
  0x30   : > { %s696_s24 = sand.u32 (!%p123_p5), 1, %s550_s7  }
  0x31   : > { %126 = sbr.rel (%p123_p5) target bundleno = 345 (0x159), region = 24  ;;  %s376_s25 = sshll.u32 (!%p123_p5), %s696_s24, 3 }
  0x32   : > { %s129_s26 = scalar_lea.sflag (!%p123_p5), [#allocation4], %s696_s24  ;;  %s132_s28 = scalar_lea.vmem (!%p123_p5), [#allocation3], %s376_s25 }
  0x38   : > { %537 = dma.done.wait (%p632_p8), %s129_s26, 128  }
  0x39   : > { %539 = vsyncadd (%p632_p8), %s129_s26, 4294967168  ;;  %v569_v0 = vmov 0.0   ;;  %v153_v1 = vld [vmem:[%s132_s28] sm:$0xff]  ;;  %s570_s27 = smov 1   ;;  %s571_s29 = smov 127   ;;  %v160_v7 = vlaneseq  ;;  %vm198_vm0 = vcmask 7168  }
  0x3a   : > { %151 = vst [vmem:[#allocation2] sm:$0xf] %v569_v0  ;;  %152 = vst [vmem:[#allocation2 + $0xc] sm:$0xf] %v569_v0  ;;  %v214_v5 = vcombine.high %v153_v1, %v153_v1  ;;  %vm221_vm3 = vcmask 1039360   ;;  %s572_s18 = smov 16  }
  0x3b   : > { %154 = vst [vmem:[#allocation2 + $0x4] sm:$0xff] %v153_v1  ;;  %v161_v8 = vand.u32 127, %v160_v7  ;;  %s573_s30 = smov 112   ;;  %vm246_vm6 = vcmask 1043456   ;;  %vm248_vm7 = vcmask 130048   ;;  %vm261_vm8 = vcmask 916480  }
  0x3c   : > { %s384_s2 = sshll.u32 %s558_s9, 7  ;;  %s150_s3 = scalar_lea.vmem [#allocation6], %s376_s25 }
  0x3d   : > { %v162_v9 = vadd.s32 128, %v161_v8  ;;  %v167_v10 = vand.u32 15, %v161_v8  ;;  %s284_s4 = sshll.u32 %s150_s3, 4  ;;  %s712_s13 = scalar_lea.hbm %s762_s1, %s384_s2  ;;  %s714_s4 = int_to_ptr.vmem [resolvable:$true] %s284_s4 }
  0x3e   : > { %s268_s15 = scalar_lea.sflag [#allocation5], %s696_s24  ;;  %s484_s16 = scalar_lea.vmem %s714_s4, 128 }
  0x3f   : > { %v174_v11 = vand.u32 15, %v162_v9  ;;  %vm187_vm1 = vcmp.gt.s32.totalorder %v167_v10, 0  ;;  %vm210_vm4 = vcmp.lt.s32.totalorder %v167_v10, 15  ;;  %p485_p8 = scmp.ne.s32.totalorder %s714_s4, %s484_s16  ;;  %p771_p9 = scmp.ne.s32.totalorder %s766_s19, 0 }
  0x40   : > { %s574_s9 = smov [#allocation6]  }
  0x41   : > { %v159_v6 = vld [vmem:[#allocation2 + $0xc] sm:$0xf]  ;;  %vm188_vm2 = vcmp.gt.s32.totalorder %v174_v11, 0  ;;  %vm211_vm5 = vcmp.lt.s32.totalorder %v174_v11, 15  ;;  %p486_p11 = pnand %p485_p8, %p771_p9  ;;  %s488_s17 = sshll.u32 %s574_s9, 4  ;;  %s489_s17 = int_to_ptr.vmem [resolvable:$false] %s488_s17 }
  0x42   : > { %v157_v2 = vld [vmem:[#allocation2 + $0x8] sm:$0xf]  ;;  %v156_v3 = vld [vmem:[#allocation2] sm:$0xff]  ;;  %v237_v32 = vld [vmem:[#allocation2 + $0xc] sm:$0xf]  ;;  %s490_s22 = scalar_lea.vmem %s489_s17, 256  ;;  %p491_p7 = scmp.lt.s32.totalorder %s714_s4, %s489_s17 }
  0x43   : > { %196 = vrot.lane.b32.xlu1 %v157_v2, %s570_s27  ;;  %192 = vrot.lane.b32.xlu0 %v156_v3, %s570_s27  ;;  %v191_v4 = vcombine.high %v156_v3, %v156_v3  ;;  %p487_p0 = pneg %p486_p11  ;;  %p492_p13 = scmp.lt.s32.totalorder %s490_s22, %s484_s16 }
  0x45   : > { %p493_p3 = por %p492_p13, %p491_p7 }
  0x47   : > { %215 = vrot.lane.b32.xlu1 %v153_v1, %s571_s29  ;;  %194 = vrot.lane.b32.xlu0 %v191_v4, %s570_s27  ;;  %p494_p6 = pnand %p493_p3, %p487_p0 }
  0x4b   : > { %219 = vrot.lane.b32.xlu1 %v159_v6, %s571_s29  ;;  %217 = vrot.lane.b32.xlu0 %v214_v5, %s571_s29 }
  0xb5   : > { %v197_v12 = vpop.permute.xlu1 %196  ;;  %v193_v13 = vpop.permute.xlu0 %192 }
  0xb9   : > { %v216_v14 = vpop.permute.xlu1 %215  ;;  %v195_v15 = vpop.permute.xlu0 %194 }
  0xba   : > { %v199_v16 = vsel %vm198_vm0, %v193_v13, %v195_v15  ;;  %v200_v17 = vsel %vm198_vm0, %v195_v15, %v197_v12 }
  0xbb   : > { %v203_v18 = vsel %vm187_vm1, %v199_v16, 0.0  ;;  %v204_v19 = vsel %vm188_vm2, %v200_v17, 0.0 }
  0xbc   : > { %v207_v20 = vcombine.low %v203_v18, %v204_v19 }
  0xbd   : > { %v220_v21 = vpop.permute.xlu1 %219  ;;  %v218_v22 = vpop.permute.xlu0 %217 }
  0xbe   : > { %v222_v23 = vsel %vm221_vm3, %v216_v14, %v218_v22  ;;  %v223_v24 = vsel %vm221_vm3, %v218_v22, %v220_v21  ;;  %v209_v27 = vadd.f32 %v207_v20, %v153_v1 }
  0xbf   : > { %v226_v25 = vsel %vm210_vm4, %v222_v23, 0.0  ;;  %v227_v26 = vsel %vm211_vm5, %v223_v24, 0.0 }
  0xc0   : > { %v230_v28 = vcombine.low %v226_v25, %v227_v26 }
  0xc2   : > { %v232_v29 = vadd.f32 %v230_v28, %v209_v27 }
  0xc4   : > { %233 = vst [vmem:[#allocation2 + $0x4] sm:$0xff] %v232_v29 }
  0xcb   : > { %v235_v30 = vld [vmem:[#allocation2 + $0x8] sm:$0xf]  ;;  %v234_v31 = vld [vmem:[#allocation2] sm:$0xff] }
  0xcc   : > { %242 = vrot.lane.b32.xlu1 %v235_v30, %s572_s18  ;;  %240 = vrot.lane.b32.xlu0 %v234_v31, %s572_s18 }
  0xd0   : > { %256 = vrot.lane.b32.xlu1 %v237_v32, %s573_s30  ;;  %254 = vrot.lane.b32.xlu0 %v232_v29, %s573_s30 }
 0x13e   : > { %v243_v33 = vpop.permute.xlu1 %242  ;;  %v241_v34 = vpop.permute.xlu0 %240 }
 0x13f   : > { %v245_v35 = vrot.slane %v243_v33, 4  ;;  %v244_v36 = vrot.slane %v241_v34, 4 }
 0x141   : > { %v247_v37 = vsel %vm246_vm6, %v244_v36, %v245_v35 }
 0x142   : > { %v249_v38 = vsel %vm248_vm7, %v241_v34, %v247_v37  ;;  %v257_v39 = vpop.permute.xlu1 %256  ;;  %v255_v40 = vpop.permute.xlu0 %254 }
 0x143   : > { %v259_v41 = vrot.slane %v257_v39, 4  ;;  %v258_v42 = vrot.slane %v255_v40, 4  ;;  %v251_v43 = vadd.f32 %v249_v38, %v232_v29 }
 0x145   : > { %v260_v44 = vsel %vm246_vm6, %v258_v42, %v259_v41 }
 0x146   : > { %v262_v45 = vsel %vm261_vm8, %v255_v40, %v260_v44 }
 0x147   : > { %v264_v46 = vadd.f32 %v262_v45, %v251_v43 }
 0x149   : > { %v265_v47 = vmul.f32 0.11111111, %v264_v46 }
 0x14b   : > { %266 = vst [vmem:[%s150_s3] sm:$0xff] %v265_v47 }
 0x14c   : > { %497 = shalt.err (!%p494_p6)
}
 0x14d   : > { %s498_s23 = scalar_lea.hbm %s712_s13, 128  ;;  %s502_s26 = scalar_lea.hbm %s762_s1, 256 }
 0x14e   : > { %p499_p4 = scmp.ne.s32.totalorder %s712_s13, %s498_s23  ;;  %p503_p1 = scmp.lt.u32.totalorder %s712_s13, %s762_s1 }
 0x14f   : > { %p504_p2 = scmp.lt.u32.totalorder %s502_s26, %s498_s23  ;;  %p506_p8 = scmp.lt.u32.totalorder %s498_s23, %s712_s13 }
 0x150   : > { %p500_p10 = pnand %p499_p4, %p771_p9 }
 0x151   : > { %p505_p5 = por %p504_p2, %p503_p1 }
 0x152   : > { %p501_p12 = pneg %p500_p10 }
 0x153   : > { %p507_p11 = por %p506_p8, %p505_p5 }
 0x155   : > { %p508_p0 = pnand %p507_p11, %p501_p12 }
 0x157   : > { %511 = shalt.err (!%p508_p0)
}
 0x158   : > { %387 = dma.vmem_to_hbm [thread:$0]  (%p771_p9), %s714_s4, 128, %s712_s13, %s268_s15  }
 0x159 PF: > { %s296_s29 = sand.u32 1, %s546_s6   ;;  %p772_p7 = scmp.ne.s32.totalorder %s767_s21, 0 }
 0x15a   : > { %p773_p13 = scmp.ge.s32.totalorder %s566_s11, 2  ;;  %s297_s18 = scalar_lea.sflag [#allocation5], %s296_s29 }
 0x15c   : > { %p394_p3 = pnand %p773_p13, %p772_p7 }
 0x15e   : > { %541 = dma.done.wait (!%p394_p3), %s297_s18, 128  }
 0x15f   : > { %543 = vsyncadd (!%p394_p3), %s297_s18, 4294967168  ;;  %s17_s11 = sadd.s32 1, %s566_s11   ;;  %s774_s6 = smov %s550_s7 }
 0x160   : > { %p14_p6 = scmp.ge.s32.totalorder %s17_s11, 4   ;;  %s775_s7 = smov %s554_s8 }
 0x161   : > { %s776_s8 = smov %s641_s20  ;;  %s777_s9 = smov %s562_s10 }
 0x162   : > { %s778_s10 = smov %s780_s14  ;;  %16 = sbr.rel (!%p14_p6) target bundleno = 6 (0x6), region = 69 }
 0x169   :  { %302 = vsyncpa [#allocation4], 1 }
 0x16a   :  { %304 = vsyncpa [#allocation4 + $0x1], 1 }
 0x16b   :  { %305 = vsyncpa [#allocation5], 1 }
 0x16c   :  { %307 = vsyncpa [#allocation5 + $0x1], 1 }

</bundles_post_ra>
